<compile_context>
chip_gen: v6e
topology: v6e:2x2x1
jax: 0.10.0
libtpu: 0.0.40
codegen_flags: <defaults>
</compile_context>

<pallas_src>
import functools

import jax
import jax.numpy as jnp
from jax.experimental import pallas as pl
from jax.experimental.pallas import tpu as pltpu


def _round_up(x, m):
    return ((x + m - 1) // m) * m


def _default_tile_cap():
    """Generation-tuned batch-tile cap (bigger on v7x to cover its faster HBM)."""
    try:
        kind = jax.devices()[0].device_kind.lower()
    except Exception:
        return 8192
    if "v7" in kind:
        return 16384
    return 8192


def _pick_tile_b(batch):
    cap = _default_tile_cap()
    tile_b = min(cap, _round_up(max(batch, 1), 256))
    # Guarantee >= 2 grid steps when the batch permits, so v7x's two
    # TensorCores both get work (no-op on v5e/v6e).
    if batch >= 512 and pl.cdiv(batch, tile_b) < 2:
        tile_b = _round_up(pl.cdiv(batch, 2), 256)
    # Never ask for a block bigger than the array: a full-array block is
    # always layout-legal and avoids a mostly-OOB single tile.
    if tile_b > batch:
        tile_b = batch
    return tile_b


def _mlp_kernel(n_inputs, n_layers, *refs):
    """Fused MLP forward on one batch tile.

    refs = (x_0..x_{n_inputs-1},                  # (tile_b, d_k) batch-major
            w0_0..w0_{n_inputs-1}, b0,            # W0 split column-wise
            w1, b1, ..., w_{L-1}, b_{L-1},
            o_ref)                                # (1, tile_b)
    w_i: (out_i, in_i) torch layout (matmul dtype); b_i: (out_i, 1) f32.
    Activations are carried feature-major: (out_i, tile_b).
    """
    x_refs = refs[:n_inputs]
    o_ref = refs[-1]
    param_refs = refs[n_inputs:-1]

    idx = 0
    # ---- layer 0: h^T = sum_k W0_k @ x_k^T  (fused concat) ----
    h = None
    for k in range(n_inputs):
        w = param_refs[idx][...]  # (out0, d_k)
        idx += 1
        part = jax.lax.dot_general(
            w, x_refs[k][...].astype(w.dtype),
            dimension_numbers=(((1,), (1,)), ((), ())),  # contract the feature dims
            preferred_element_type=jnp.float32)          # (out0, tile_b)
        h = part if h is None else h + part
    b0 = param_refs[idx][...]  # (out0, 1) -> lane-broadcast
    idx += 1
    h = h + b0
    if n_layers > 1:
        h = jnp.maximum(h, 0.0)

    # ---- remaining layers ----
    for i in range(1, n_layers):
        w = param_refs[idx][...]      # (out_i, in_i)
        idx += 1
        b = param_refs[idx][...]      # (out_i, 1)
        idx += 1
        h = jnp.dot(w, h.astype(w.dtype), preferred_element_type=jnp.float32) + b
        if i < n_layers - 1:
            h = jnp.maximum(h, 0.0)   # ReLU on VPU, f32

    # Sigmoid via a single EUP tanh (numerically safe, no VALU divide).
    o_ref[...] = (0.5 * (jnp.tanh(0.5 * h) + 1.0)).astype(o_ref.dtype)


def ad_classifier_forward(x, params, *, tile_b=None, matmul_dtype=jnp.bfloat16):
    """Forward pass of ADClassifier.

    x:      (batch, gene_dim + cell_dim) array, OR a tuple/list
            (x_gene, x_cell) to fuse the concat into the kernel.
    params: list of (W, b) in torch nn.Linear layout: W (out, in), b (out,).
    Returns (batch, 1) sigmoid probabilities in x's dtype.
    """
    xs = tuple(x) if isinstance(x, (tuple, list)) else (x,)
    n_inputs = len(xs)
    batch = xs[0].shape[0]
    in_dims = [xx.shape[1] for xx in xs]
    in_dim = sum(in_dims)
    n_layers = len(params)
    assert params[0][0].shape[1] == in_dim

    if tile_b is None:
        tile_b = _pick_tile_b(batch)
    tile_b = max(1, min(tile_b, batch))
    grid = pl.cdiv(batch, tile_b)

    # ---- input specs: batch-tiled x tensors ----
    in_specs = [pl.BlockSpec((tile_b, d), lambda i: (i, 0)) for d in in_dims]

    # ---- params: flatten, split W0 column-wise across the x inputs ----
    flat = []
    w0, b0 = params[0]
    col = 0
    for d in in_dims:
        w0_part = w0[:, col:col + d].astype(matmul_dtype)   # cast once; VMEM-resident
        col += d
        flat.append(w0_part)
        in_specs.append(pl.BlockSpec(w0_part.shape, lambda i: (0, 0)))
    flat.append(b0.reshape(-1, 1).astype(jnp.float32))
    in_specs.append(pl.BlockSpec((b0.shape[0], 1), lambda i: (0, 0)))
    for w, b in params[1:]:
        flat.append(w.astype(matmul_dtype))
        in_specs.append(pl.BlockSpec(w.shape, lambda i: (0, 0)))
        flat.append(b.reshape(-1, 1).astype(jnp.float32))
        in_specs.append(pl.BlockSpec((b.shape[0], 1), lambda i: (0, 0)))

    dims = [in_dim] + [w.shape[0] for w, _ in params]
    flops = 2 * batch * sum(dims[i] * dims[i + 1] for i in range(len(dims) - 1))
    bytes_accessed = (sum(xx.size * xx.dtype.itemsize for xx in xs)
                      + sum(w.size * 2 + b.size * 4 for w, b in params)
                      + batch * 4)

    out = pl.pallas_call(
        functools.partial(_mlp_kernel, n_inputs, n_layers),
        out_shape=jax.ShapeDtypeStruct((1, batch), jnp.float32),
        grid=(grid,),
        in_specs=in_specs,
        out_specs=pl.BlockSpec((1, tile_b), lambda i: (0, i)),
        compiler_params=pltpu.CompilerParams(
            dimension_semantics=("parallel",),   # megacore split on v7x
        ),
        cost_estimate=pl.CostEstimate(
            flops=flops, transcendentals=batch, bytes_accessed=bytes_accessed),
    )(*xs, *flat)
    return out[0, :batch].reshape(batch, 1).astype(xs[0].dtype)


def init_params(key, gene_input_dim, cell_type_input_dim, hidden_dims):
    """Deterministic init mirroring torch.nn.Linear (W: (out, in), b: (out,))."""
    dims = [gene_input_dim + cell_type_input_dim] + list(hidden_dims) + [1]
    params = []
    for i in range(len(dims) - 1):
        in_d, out_d = dims[i], dims[i + 1]
        key, kw, kb = jax.random.split(key, 3)
        bound = 1.0 / jnp.sqrt(in_d)
        w = jax.random.uniform(kw, (out_d, in_d), jnp.float32, -bound, bound)
        b = jax.random.uniform(kb, (out_d,), jnp.float32, -bound, bound)
        params.append((w, b))
    return params


def reference_forward(x, params, matmul_dtype=None):
    """Pure-JAX reference. matmul_dtype=None -> full f32 (torch semantics);
    matmul_dtype=bf16 -> mimics the kernel's mixed-precision recipe."""
    h = x.astype(jnp.float32)
    for i, (w, b) in enumerate(params):
        if matmul_dtype is not None:
            hm, wm = h.astype(matmul_dtype), w.astype(matmul_dtype)
        else:
            hm, wm = h, w
        h = jnp.dot(hm, wm.T, preferred_element_type=jnp.float32) + b
        if i < len(params) - 1:
            h = jnp.maximum(h, 0.0)
        else:
            h = jax.nn.sigmoid(h)
    return h


if __name__ == "__main__":
    gene_input_dim = 24
    cell_type_input_dim = 8
    hidden_dims = [32, 16]

    key = jax.random.PRNGKey(0)
    params = init_params(key, gene_input_dim, cell_type_input_dim, hidden_dims)
    key, kx = jax.random.split(key)

    def check(out, x_full):
        ref_bf16 = reference_forward(x_full, params, matmul_dtype=jnp.bfloat16)
        ref_f32 = reference_forward(x_full, params)
        # Tight check vs. a reference using the same bf16-operand recipe.
        assert jnp.allclose(out, ref_bf16, atol=2e-3, rtol=2e-3), (
            float(jnp.max(jnp.abs(out - ref_bf16))))
        # Loose check vs. the full-f32 (torch-semantics) reference.
        assert jnp.allclose(out, ref_f32, atol=3e-2), (
            float(jnp.max(jnp.abs(out - ref_f32))))

    # batch=8: single full-array block.  batch=600: grid of 2 with a ragged
    # last tile (no jnp.pad pass, tail outputs discarded by the wrapper slice).
    for batch in (8, 600):
        kx, kb = jax.random.split(kx)
        x = jax.random.normal(
            kb, (batch, gene_input_dim + cell_type_input_dim), jnp.float32)
        out = jax.block_until_ready(ad_classifier_forward(x, params))
        assert out.shape == (batch, 1)
        check(out, x)

    # Fused-concat path: (x_gene, x_cell) passed separately, W0 split in-kernel.
    batch = 300
    kx, kg, kc = jax.random.split(kx, 3)
    x_gene = jax.random.normal(kg, (batch, gene_input_dim), jnp.float32)
    x_cell = jax.random.normal(kc, (batch, cell_type_input_dim), jnp.float32)
    out = jax.block_until_ready(ad_classifier_forward((x_gene, x_cell), params))
    assert out.shape == (batch, 1)
    check(out, jnp.concatenate([x_gene, x_cell], axis=1))

    print("KERNEL_OK")
</pallas_src>

<mosaic_0001>
module attributes {stable_mosaic.version = 11 : i64} {
  func.func @_mlp_kernel(%arg0: i32, %arg1: memref<8x32xf32, #tpu.memory_space<vmem>>, %arg2: memref<32x32xbf16, #tpu.memory_space<vmem>>, %arg3: memref<32x1xf32, #tpu.memory_space<vmem>>, %arg4: memref<16x32xbf16, #tpu.memory_space<vmem>>, %arg5: memref<16x1xf32, #tpu.memory_space<vmem>>, %arg6: memref<1x16xbf16, #tpu.memory_space<vmem>>, %arg7: memref<1x1xf32, #tpu.memory_space<vmem>>, %arg8: memref<1x8xf32, #tpu.memory_space<vmem>>) attributes {dimension_semantics = [#tpu.dimension_semantics<parallel>], iteration_bounds = array<i64: 1>, scalar_prefetch = 0 : i64, scratch_operands = 0 : i64, tpu.core_type = #tpu.core_type<tc>, window_params = [{transform_indices = @transform_0, window_bounds = array<i64: 8, 32>}, {pipeline_mode = #tpu.pipeline_mode<synchronous>, transform_indices = @transform_1, window_bounds = array<i64: 32, 32>}, {pipeline_mode = #tpu.pipeline_mode<synchronous>, transform_indices = @transform_2, window_bounds = array<i64: 32, 1>}, {pipeline_mode = #tpu.pipeline_mode<synchronous>, transform_indices = @transform_3, window_bounds = array<i64: 16, 32>}, {pipeline_mode = #tpu.pipeline_mode<synchronous>, transform_indices = @transform_4, window_bounds = array<i64: 16, 1>}, {pipeline_mode = #tpu.pipeline_mode<synchronous>, transform_indices = @transform_5, window_bounds = array<i64: 1, 16>}, {pipeline_mode = #tpu.pipeline_mode<synchronous>, transform_indices = @transform_6, window_bounds = array<i64: 1, 1>}, {transform_indices = @transform_7, window_bounds = array<i64: 1, 8>}]} {
    %c0 = arith.constant 0 : index
    %c0_0 = arith.constant 0 : index
    %0 = vector.load %arg2[%c0, %c0_0] : memref<32x32xbf16, #tpu.memory_space<vmem>>, vector<32x32xbf16>
    %c0_1 = arith.constant 0 : index
    %c0_2 = arith.constant 0 : index
    %1 = vector.load %arg1[%c0_1, %c0_2] : memref<8x32xf32, #tpu.memory_space<vmem>>, vector<8x32xf32>
    %2 = arith.truncf %1 : vector<8x32xf32> to vector<8x32xbf16>
    %cst = arith.constant dense<0.000000e+00> : vector<32x8xf32>
    %3 = tpu.matmul %0, %2, %cst {dimension_numbers = #tpu.dot_dimension_numbers<[1], [1], [0], [0], [0, 0, 1, 0], [], []>} : vector<32x32xbf16>, vector<8x32xbf16>, vector<32x8xf32> -> vector<32x8xf32>
    %c0_3 = arith.constant 0 : index
    %c0_4 = arith.constant 0 : index
    %4 = vector.load %arg3[%c0_3, %c0_4] : memref<32x1xf32, #tpu.memory_space<vmem>>, vector<32x1xf32>
    %5 = vector.broadcast %4 : vector<32x1xf32> to vector<32x8xf32>
    %6 = arith.addf %3, %5 : vector<32x8xf32>
    %cst_5 = arith.constant 0.000000e+00 : f32
    %7 = vector.broadcast %cst_5 : f32 to vector<32x8xf32>
    %8 = arith.maximumf %6, %7 : vector<32x8xf32>
    %c0_6 = arith.constant 0 : index
    %c0_7 = arith.constant 0 : index
    %9 = vector.load %arg4[%c0_6, %c0_7] : memref<16x32xbf16, #tpu.memory_space<vmem>>, vector<16x32xbf16>
    %c0_8 = arith.constant 0 : index
    %c0_9 = arith.constant 0 : index
    %10 = vector.load %arg5[%c0_8, %c0_9] : memref<16x1xf32, #tpu.memory_space<vmem>>, vector<16x1xf32>
    %11 = arith.truncf %8 : vector<32x8xf32> to vector<32x8xbf16>
    %cst_10 = arith.constant dense<0.000000e+00> : vector<16x8xf32>
    %12 = tpu.matmul %9, %11, %cst_10 {dimension_numbers = #tpu.dot_dimension_numbers<[1], [0], [0], [1], [0, 0, 1, 1], [], []>} : vector<16x32xbf16>, vector<32x8xbf16>, vector<16x8xf32> -> vector<16x8xf32>
    %13 = vector.broadcast %10 : vector<16x1xf32> to vector<16x8xf32>
    %14 = arith.addf %12, %13 : vector<16x8xf32>
    %cst_11 = arith.constant 0.000000e+00 : f32
    %15 = vector.broadcast %cst_11 : f32 to vector<16x8xf32>
    %16 = arith.maximumf %14, %15 : vector<16x8xf32>
    %c0_12 = arith.constant 0 : index
    %c0_13 = arith.constant 0 : index
    %17 = vector.load %arg6[%c0_12, %c0_13] : memref<1x16xbf16, #tpu.memory_space<vmem>>, vector<1x16xbf16>
    %c0_14 = arith.constant 0 : index
    %c0_15 = arith.constant 0 : index
    %18 = vector.load %arg7[%c0_14, %c0_15] : memref<1x1xf32, #tpu.memory_space<vmem>>, vector<1x1xf32>
    %19 = arith.truncf %16 : vector<16x8xf32> to vector<16x8xbf16>
    %cst_16 = arith.constant dense<0.000000e+00> : vector<1x8xf32>
    %20 = tpu.matmul %17, %19, %cst_16 {dimension_numbers = #tpu.dot_dimension_numbers<[1], [0], [0], [1], [0, 0, 1, 1], [], []>} : vector<1x16xbf16>, vector<16x8xbf16>, vector<1x8xf32> -> vector<1x8xf32>
    %21 = vector.broadcast %18 : vector<1x1xf32> to vector<1x8xf32>
    %22 = arith.addf %20, %21 : vector<1x8xf32>
    %cst_17 = arith.constant 5.000000e-01 : f32
    %23 = vector.broadcast %cst_17 : f32 to vector<1x8xf32>
    %24 = arith.mulf %23, %22 : vector<1x8xf32>
    %25 = math.tanh %24 : vector<1x8xf32>
    %cst_18 = arith.constant 1.000000e+00 : f32
    %26 = vector.broadcast %cst_18 : f32 to vector<1x8xf32>
    %27 = arith.addf %25, %26 : vector<1x8xf32>
    %cst_19 = arith.constant 5.000000e-01 : f32
    %28 = vector.broadcast %cst_19 : f32 to vector<1x8xf32>
    %29 = arith.mulf %28, %27 : vector<1x8xf32>
    %c0_20 = arith.constant 0 : index
    %c0_21 = arith.constant 0 : index
    %30 = vector.load %arg8[%c0_20, %c0_21] : memref<1x8xf32, #tpu.memory_space<vmem>>, vector<1x8xf32>
    tpu.vector_store %arg8[%c0_20, %c0_21], %29 {strides = array<i32>} : memref<1x8xf32, #tpu.memory_space<vmem>>, vector<1x8xf32>,
    return
  }
  func.func @transform_0(%arg0: i32) -> (i32, i32) {
    %c0_i32 = arith.constant 0 : i32
    %c0_i32_0 = arith.constant 0 : i32
    return %arg0, %c0_i32 : i32, i32
  }
  func.func @transform_1(%arg0: i32) -> (i32, i32) {
    %c0_i32 = arith.constant 0 : i32
    %c0_i32_0 = arith.constant 0 : i32
    %c0_i32_1 = arith.constant 0 : i32
    return %c0_i32, %c0_i32_0 : i32, i32
  }
  func.func @transform_2(%arg0: i32) -> (i32, i32) {
    %c0_i32 = arith.constant 0 : i32
    %c0_i32_0 = arith.constant 0 : i32
    %c0_i32_1 = arith.constant 0 : i32
    return %c0_i32, %c0_i32_0 : i32, i32
  }
  func.func @transform_3(%arg0: i32) -> (i32, i32) {
    %c0_i32 = arith.constant 0 : i32
    %c0_i32_0 = arith.constant 0 : i32
    %c0_i32_1 = arith.constant 0 : i32
    return %c0_i32, %c0_i32_0 : i32, i32
  }
  func.func @transform_4(%arg0: i32) -> (i32, i32) {
    %c0_i32 = arith.constant 0 : i32
    %c0_i32_0 = arith.constant 0 : i32
    %c0_i32_1 = arith.constant 0 : i32
    return %c0_i32, %c0_i32_0 : i32, i32
  }
  func.func @transform_5(%arg0: i32) -> (i32, i32) {
    %c0_i32 = arith.constant 0 : i32
    %c0_i32_0 = arith.constant 0 : i32
    %c0_i32_1 = arith.constant 0 : i32
    return %c0_i32, %c0_i32_0 : i32, i32
  }
  func.func @transform_6(%arg0: i32) -> (i32, i32) {
    %c0_i32 = arith.constant 0 : i32
    %c0_i32_0 = arith.constant 0 : i32
    %c0_i32_1 = arith.constant 0 : i32
    return %c0_i32, %c0_i32_0 : i32, i32
  }
  func.func @transform_7(%arg0: i32) -> (i32, i32) {
    %c0_i32 = arith.constant 0 : i32
    %c0_i32_0 = arith.constant 0 : i32
    return %c0_i32, %arg0 : i32, i32
  }
}

</mosaic_0001>

<bundles_post_ra>
// kernel: tpu_custom_call.1
= control target key start
LH: loop header
LB: loop body
LE: loop exit
PB: predicated region body
PF: predicated region fallthrough
CT: control target
= control target key end

     0   :  { %s433_s0 = inlined_call_operand.vmem [shape: f32[8,32], index: 0, kind: input, shape index: {}]   ;;  %s434_s1 = inlined_call_operand.vmem [shape: bf16[32,32], index: 1, kind: input, shape index: {}]   ;;  %s435_s2 = inlined_call_operand.vmem [shape: f32[32,1], index: 2, kind: input, shape index: {}]   ;;  %s436_s3 = inlined_call_operand.vmem [shape: bf16[16,32], index: 3, kind: input, shape index: {}]   ;;  %s437_s4 = inlined_call_operand.vmem [shape: f32[16,1], index: 4, kind: input, shape index: {}]   ;;  %s438_s5 = inlined_call_operand.vmem [shape: bf16[1,16], index: 5, kind: input, shape index: {}]   ;;  %s439_s6 = inlined_call_operand.<no memory space> [shape: f32[1,1], index: 6, kind: input, shape index: {}]   ;;  %s440_s7 = inlined_call_operand.hbm [shape: f32[1,8], index: 7, kind: output, shape index: {}]  }
   0x1   :  { %v12_v0 = vstv %s439_s6 }
   0x2   :  { %13 = vst [vmem:[#allocation2] sm:$0x1] %v12_v0 }
   0x3   :  { %v34_v1 = vld [vmem:[%s433_s0] sm:$0xff]  ;;  %vm70_vm0 = vcmask 261120   ;;  %v345_v4 = vmov 0   ;;  %v38_v5 = vld [vmem:[%s435_s2 + $0x10] sm:$0xff]  ;;  %v39_v8 = vld [vmem:[%s435_s2 + $0x18] sm:$0xff] }
   0x4   :  { %v35_v2 = vpack.c.bf16 %v34_v1, %v34_v1  ;;  %v318_v3 = vld [vmem:[%s434_s1] sm:$0xff]   ;;  %316 = vset.pattern.permute.xlu0 %v345_v4  ;;  %317 = vset.pattern.permute.xlu1 %v345_v4 }
   0x5   :  { %293 = vmatprep.mubr.msk.bf16.mxu0 %vm70_vm0, %v318_v3  ;;  %v36_v7 = vld [vmem:[%s435_s2] sm:$0xff]  ;;  %52 = vperm.xlu0 %316, %v38_v5  }
   0x6   :  { %311 = vmatprep.subr.msk.bf16.mxu0 %vm70_vm0, %v35_v2  ;;  %v78_v6 = vsel %vm70_vm0, %v35_v2, 0  ;;  %42 = vperm.xlu1 %317, %v36_v7  }
   0x7   :  { %292 = vmatpush3.bf16.xpose.msra.mxu0 %v78_v6 }
   0x8   :  { %14 = vsyncpa [#allocation4], 0  ;;  %v37_v9 = vld [vmem:[%s435_s2 + $0x8] sm:$0xff]  ;;  %v135_v11 = vld [vmem:[%s437_s4] sm:$0xff]  ;;  %v346_v14 = vmov 0.0   ;;  %vm347_vm1 = vmmov 0   ;;  %v208_v46 = vlaneseq }
   0x9   :  { %v319_v10 = vld [vmem:[%s434_s1 + $0x8] sm:$0xff]   ;;  %57 = vperm.xlu0 %316, %v39_v8   ;;  %v201_v13 = vld [vmem:[#allocation2] sm:$0x1]  ;;  %297 = vmatprep.subr.bf16.mxu1 %v346_v14  ;;  %vm212_vm2 = vcmask 130048   ;;  %vm260_vm3 = vcmask 57344  }
   0xa   :  { %47 = vperm.xlu1 %317, %v37_v9   ;;  %v136_v12 = vld [vmem:[%s437_s4 + $0x8] sm:$0xff]  ;;  %305 = vmatprep.subr.bf16.mxu0 %v346_v14  ;;  %v320_v33 = vld [vmem:[%s436_s3] sm:$0xff]   ;;  %v209_v47 = vshrl.u32 %v208_v46, 7  ;;  %s348_s3 = smov [#allocation3]  }
   0xb   :  { %301 = vmatprep.mubr.msk.bf16.mxu1 %vm347_vm1, %v346_v14  ;;  %v200_v45 = vld [vmem:[%s438_s5] sm:$0x1]  ;;  %s268_s20 = sshll.u32 %s348_s3, 4  ;;  %s269_s20 = int_to_ptr.vmem [resolvable:$true] %s268_s20 }
   0xc   :  { %v210_v48 = vsub.s32 0, %v209_v47  ;;  %s323_s5 = scalar_lea.vmem %s269_s20, 16  ;;  %s327_s21 = scalar_lea.vmem %s269_s20, 32 }
   0xd   :  { %141 = vperm.xlu0 %316, %v135_v11   ;;  %p324_p0 = scmp.ne.s32.totalorder %s269_s20, %s323_s5  ;;  %p328_p1 = scmp.lt.s32.totalorder %s269_s20, %s269_s20 }
   0xe   :  { %294 = vmatmul.mubr.msk.bf16.vlgmr.msra.gmra.mxu0 %vm70_vm0, %v319_v10  ;;  %146 = vperm.xlu1 %317, %v136_v12   ;;  %p329_p2 = scmp.lt.s32.totalorder %s327_s21, %s323_s5 }
   0xf   :  { %307 = vmatprep.mubr.msk.bf16.mxu0 %vm347_vm1, %v346_v14 }
  0x10   :  { %p330_p3 = por %p329_p2, %p328_p1 }
  0x11   :  { %205 = vperm.xlu0 %316, %v201_v13  }
  0x12   :  { %p331_p4 = pnand %p330_p3, %p324_p0 }
  0x80   :  { %v53_v15 = vpop.permute.xlu0 %52 }
  0x81   :  { %v43_v16 = vpop.permute.xlu1 %42 }
  0x84   :  { %v58_v20 = vpop.permute.xlu0 %57 }
  0x85   :  { %v48_v23 = vpop.permute.xlu1 %47 }
  0x88   :  { %v142_v35 = vpop.permute.xlu0 %141 }
  0x89   :  { %v147_v38 = vpop.permute.xlu1 %146 }
  0x8c   :  { %v206_v49 = vpop.permute.xlu0 %205 }
  0x8d   :  { %v211_v50 = vrot.slane %v206_v49, %v210_v48 }
  0xce   :  { %v295_v17 = vpop.f32.mrf.mxu0 }
  0xcf   :  { %v123_v19 = vadd.f32 %v295_v17, %v53_v15 }
  0xd0   :  { %v114_v18 = vpop.f32.mrf.mxu0 }
  0xd1   :  { %v131_v25 = vmax.f32 %v123_v19, 0.0  ;;  %v115_v26 = vadd.f32 %v114_v18, %v43_v16 }
  0xd2   :  { %v296_v21 = vpop.f32.mrf.mxu0 }
  0xd3   :  { %v126_v22 = vadd.f32 %v296_v21, %v58_v20  ;;  %v129_v31 = vmax.f32 %v115_v26, 0.0 }
  0xd4   :  { %v117_v24 = vpop.f32.mrf.mxu0 }
  0xd5   :  { %v132_v27 = vmax.f32 %v126_v22, 0.0  ;;  %v118_v28 = vadd.f32 %v117_v24, %v48_v23 }
  0xd7   :  { %v130_v29 = vmax.f32 %v118_v28, 0.0  ;;  %v138_v30 = vpack.c.bf16 %v132_v27, %v131_v25 }
  0xd9   :  { %298 = vmatpush3.bf16.msra.mxu1 %v138_v30  ;;  %v137_v32 = vpack.c.bf16 %v130_v29, %v129_v31 }
  0xda   :  { %299 = vmatprep.subr.bf16.mxu1 %v346_v14 }
  0xdd   :  { %300 = vmatpush3.bf16.msra.mxu1 %v137_v32 }
  0xe0   :  { %302 = vmatmul.mubr.msk.bf16.vlgmr.msra.gmra.mxu1 %vm70_vm0, %v320_v33 }
 0x1a0   :  { %v191_v34 = vpop.f32.mrf.mxu1 }
 0x1a1   :  { %v192_v37 = vadd.f32 %v191_v34, %v142_v35 }
 0x1a2   :  { %v303_v36 = vpop.f32.mrf.mxu1 }
 0x1a3   :  { %v198_v42 = vmax.f32 %v192_v37, 0.0 }
 0x1a4   :  { %v194_v39 = vpop.f32.mrf.mxu1 }
 0x1a5   :  { %v195_v40 = vadd.f32 %v194_v39, %v147_v38 }
 0x1a6   :  { %v304_v41 = vpop.f32.mrf.mxu1 }
 0x1a7   :  { %v199_v43 = vmax.f32 %v195_v40, 0.0 }
 0x1a9   :  { %v202_v44 = vpack.c.bf16 %v199_v43, %v198_v42 }
 0x1ab   :  { %306 = vmatpush3.bf16.msra.mxu0 %v202_v44 }
 0x1ae   :  { %308 = vmatmul.mubr.msk.bf16.vlgmr.msra.gmra.mxu0 %vm212_vm2, %v200_v45 }
 0x26e   :  { %v250_v51 = vpop.f32.mrf.mxu0 }
 0x26f   :  { %v251_v52 = vadd.f32 %v250_v51, %v211_v50 }
 0x270   :  { %v309_v53 = vpop.f32.mrf.mxu0 }
 0x271   :  { %v256_v54 = vmul.f32 0.5, %v251_v52 }
 0x272   :  { %v253_v55 = vpop.f32.mrf.mxu0 }
 0x273   :  { %321 = vtanh.f32 %v256_v54 }
 0x274   :  { %v310_v56 = vpop.f32.mrf.mxu0 }
 0x280   :  { %v322_v57 = vpop.eup %321 }
 0x281   :  { %v258_v58 = vadd.f32 1.0, %v322_v57 }
 0x283   :  { %v259_v59 = vmul.f32 0.5, %v258_v58 }
 0x285   :  { %261 = vst.msk [vmem:[#allocation3] sm:$0x1] %vm260_vm3, %v259_v59 }
 0x286   :  { %334 = shalt.err (!%p331_p4)
}
 0x287   :  { %271 = dma.vmem_to_hbm [thread:$0]  %s269_s20, 16, %s440_s7, [#allocation4]  }
 0x288   :  { %343 = dma.done.wait [#allocation4], 16  }
 0x289   :  { %344 = vsyncadd [#allocation4], 4294967280 }
 0x28a   :  { %275 = vsyncpa [#allocation4], 1 }

</bundles_post_ra>
